<compile_context>
chip_gen: v5e
topology: v5e:2x2
jax: 0.10.0
libtpu: 0.0.40
codegen_flags: <defaults>
</compile_context>

<pallas_src>
import functools

import jax
import jax.numpy as jnp
from jax.experimental import pallas as pl
from jax.experimental.pallas import tpu as pltpu

_LANE = 128


def _snake_kernel(x_ref, o_ref, *, two_alpha: float, half_inv_alpha: float):
    # y = x + (1/a) * sin(a*x)^2 = x + (1/(2a)) * (1 - cos(2a*x))
    x = x_ref[...].astype(jnp.float32)
    y = x + half_inv_alpha * (1.0 - jnp.cos(two_alpha * x))
    o_ref[...] = y.astype(o_ref.dtype)


def _snake_jnp(x, alpha):
    # Same rewrite / f32 internal compute as the kernel (used for the tiny ragged tail).
    xf = x.astype(jnp.float32)
    y = xf + (1.0 / (2.0 * alpha)) * (1.0 - jnp.cos(2.0 * alpha * xf))
    return y.astype(x.dtype)


def _round_up(a: int, b: int) -> int:
    return ((a + b - 1) // b) * b


def _chip_profile():
    """(block_bytes, vmem_limit_bytes or None, multi_tensorcore) for the local chip."""
    kind = ""
    try:
        kind = jax.devices()[0].device_kind.lower()
    except Exception:
        pass
    if "v7" in kind or "tpu7" in kind:
        # 8 MiB blocks -> in+out double buffers = 32 MiB; raise scoped VMEM to 48 MiB
        # (physical 64 MiB).  Two TensorCores -> split small grids.
        return 8 << 20, 48 << 20, True
    if "v6" in kind:
        # 4 MiB blocks -> 16 MiB double-buffered, under the 32 MiB scoped default.
        return 4 << 20, None, False
    # v5e (16 MiB scoped-VMEM default) and unknown chips: stay conservative.
    return 2 << 20, None, False


def _pick_tile(rows: int, itemsize: int, min_sub: int):
    """Choose (tile_rows, grid_blocks, vmem_limit_bytes) for a [rows, 128] view."""
    block_bytes, vmem_limit, multi_tc = _chip_profile()
    if rows <= min_sub:
        # Single full-extent block (block_shape == array shape is always legal).
        return rows, 1, None
    # Constant block BYTES across dtypes (bf16 gets 2x the rows of f32).
    tile = max(min_sub, block_bytes // (_LANE * itemsize))
    tile = _round_up(tile, min_sub)
    tile = min(tile, _round_up(rows, min_sub))
    if multi_tc:
        # Balance across both TensorCores for small / medium inputs: aim for an even
        # block count so megacore sharding via "parallel" is not gated by a long tail.
        nb = pl.cdiv(rows, tile)
        if nb < 8:
            nb = max(2, nb)
            if nb % 2:
                nb += 1
            tile = min(tile, _round_up(pl.cdiv(rows, nb), min_sub))
    grid_blocks = pl.cdiv(rows, tile)
    return tile, grid_blocks, vmem_limit


def _snake_pallas_2d(x2d: jax.Array, alpha: float) -> jax.Array:
    rows, lane = x2d.shape
    assert lane == _LANE
    dtype = x2d.dtype
    itemsize = jnp.dtype(dtype).itemsize
    min_sub = max(8, 32 // itemsize)  # 8 sublanes for 4B dtypes, 16 for 2B, ...

    tile, grid_blocks, vmem_limit = _pick_tile(rows, itemsize, min_sub)

    kernel = functools.partial(
        _snake_kernel,
        two_alpha=float(2.0 * alpha),
        half_inv_alpha=float(1.0 / (2.0 * alpha)),
    )
    n = rows * lane
    cost = pl.CostEstimate(
        flops=4 * n,
        transcendentals=n,
        bytes_accessed=2 * n * itemsize,
    )

    return pl.pallas_call(
        kernel,
        out_shape=jax.ShapeDtypeStruct((rows, lane), dtype),
        grid_spec=pltpu.PrefetchScalarGridSpec(
            num_scalar_prefetch=0,
            grid=(grid_blocks,),
            in_specs=[pl.BlockSpec((tile, lane), lambda i: (i, 0))],
            out_specs=pl.BlockSpec((tile, lane), lambda i: (i, 0)),
        ),
        compiler_params=pltpu.CompilerParams(
            dimension_semantics=("parallel",),
            vmem_limit_bytes=vmem_limit,
        ),
        cost_estimate=cost,
    )(x2d)


def snake(x: jax.Array, alpha: float = 0.5) -> jax.Array:
    """Snake activation y = x + (1/alpha) * sin(alpha*x)**2, elementwise, any shape."""
    # TODO(synk): if the real module ever switches to a learnable per-channel alpha
    # tensor, a channel-aware layout (alpha broadcast per block) would be needed.
    orig_shape = x.shape
    n = x.size
    if n == 0:
        return x

    x_flat = x.reshape(-1)
    n_main = (n // _LANE) * _LANE

    if n_main == 0:
        # Fewer than 128 elements: launch overhead dominates, just use fused jnp.
        return _snake_jnp(x_flat, alpha).reshape(orig_shape)

    if n_main == n:
        # Lane-aligned fast path: free reshape to [rows, 128], no pad / slice / copy.
        y_flat = _snake_pallas_2d(x_flat.reshape(n // _LANE, _LANE), alpha).reshape(-1)
    else:
        # Ragged size: kernel on the lane-aligned prefix, tiny jnp epilogue on the
        # <128-element tail (avoids the old whole-tensor pad + slice round trips).
        y_main = _snake_pallas_2d(
            x_flat[:n_main].reshape(n_main // _LANE, _LANE), alpha
        )
        y_tail = _snake_jnp(x_flat[n_main:], alpha)
        y_flat = jnp.concatenate([y_main.reshape(-1), y_tail])

    return y_flat.reshape(orig_shape)


def _snake_ref(x, alpha=0.5):
    return x + (1.0 / alpha) * jnp.sin(alpha * x) ** 2


if __name__ == "__main__":
    key = jax.random.PRNGKey(0)
    # Snake is used on conv feature maps; small NCHW-like input.
    x = jax.random.normal(key, (2, 4, 16, 16), dtype=jnp.float32)

    y = snake(x, alpha=0.5)
    y = jax.block_until_ready(y)

    y_ref = _snake_ref(x, alpha=0.5)
    assert y.shape == x.shape and y.dtype == x.dtype
    assert jnp.allclose(y, y_ref, atol=1e-5, rtol=1e-5), "mismatch vs reference"

    # Ragged size (not a multiple of 128): aligned-prefix + jnp-tail path.
    x2 = jax.random.normal(jax.random.PRNGKey(1), (3, 5, 7, 11), dtype=jnp.float32)
    y2 = jax.block_until_ready(snake(x2, alpha=0.5))
    assert jnp.allclose(y2, _snake_ref(x2, 0.5), atol=1e-5, rtol=1e-5)

    # bf16 input: f32 internal compute, dtype-aware tiling.
    x3 = jax.random.normal(jax.random.PRNGKey(2), (2, 4, 64), dtype=jnp.bfloat16)
    y3 = jax.block_until_ready(snake(x3, alpha=0.5))
    assert y3.dtype == jnp.bfloat16
    assert jnp.allclose(
        y3.astype(jnp.float32),
        _snake_ref(x3.astype(jnp.float32), 0.5),
        atol=2e-2,
        rtol=2e-2,
    )

    # Empty input edge case.
    x4 = jnp.zeros((0, 4), jnp.float32)
    y4 = jax.block_until_ready(snake(x4, alpha=0.5))
    assert y4.shape == (0, 4)

    print("KERNEL_OK")
</pallas_src>

<mosaic_0001>
module attributes {stable_mosaic.version = 11 : i64} {
  func.func @_snake_kernel(%arg0: i32, %arg1: memref<16x128xf32, #tpu.memory_space<vmem>>, %arg2: memref<16x128xf32, #tpu.memory_space<vmem>>) attributes {dimension_semantics = [#tpu.dimension_semantics<parallel>], iteration_bounds = array<i64: 1>, scalar_prefetch = 0 : i64, scratch_operands = 0 : i64, tpu.core_type = #tpu.core_type<tc>, window_params = [{transform_indices = @transform_0, window_bounds = array<i64: 16, 128>}, {transform_indices = @transform_1, window_bounds = array<i64: 16, 128>}]} {
    %c0 = arith.constant 0 : index
    %c0_0 = arith.constant 0 : index
    %0 = vector.load %arg1[%c0, %c0_0] : memref<16x128xf32, #tpu.memory_space<vmem>>, vector<16x128xf32>
    %cst = arith.constant 1.000000e+00 : f32
    %1 = vector.broadcast %cst : f32 to vector<16x128xf32>
    %2 = arith.mulf %1, %0 : vector<16x128xf32>
    %3 = math.cos %2 : vector<16x128xf32>
    %cst_1 = arith.constant 1.000000e+00 : f32
    %4 = vector.broadcast %cst_1 : f32 to vector<16x128xf32>
    %5 = arith.subf %4, %3 : vector<16x128xf32>
    %cst_2 = arith.constant 1.000000e+00 : f32
    %6 = vector.broadcast %cst_2 : f32 to vector<16x128xf32>
    %7 = arith.mulf %6, %5 : vector<16x128xf32>
    %8 = arith.addf %0, %7 : vector<16x128xf32>
    %c0_3 = arith.constant 0 : index
    %c0_4 = arith.constant 0 : index
    %9 = vector.load %arg2[%c0_3, %c0_4] : memref<16x128xf32, #tpu.memory_space<vmem>>, vector<16x128xf32>
    tpu.vector_store %arg2[%c0_3, %c0_4], %8 {strides = array<i32>} : memref<16x128xf32, #tpu.memory_space<vmem>>, vector<16x128xf32>,
    return
  }
  func.func @transform_0(%arg0: i32) -> (i32, i32) {
    %c0_i32 = arith.constant 0 : i32
    %c0_i32_0 = arith.constant 0 : i32
    return %arg0, %c0_i32 : i32, i32
  }
  func.func @transform_1(%arg0: i32) -> (i32, i32) {
    %c0_i32 = arith.constant 0 : i32
    %c0_i32_0 = arith.constant 0 : i32
    return %arg0, %c0_i32 : i32, i32
  }
}

</mosaic_0001>

<bundles_post_ra>
// kernel: tpu_custom_call.1
= control target key start
LH: loop header
LB: loop body
LE: loop exit
PB: predicated region body
PF: predicated region fallthrough
CT: control target
= control target key end

     0   :  { %6 = vsyncpa [#allocation3], 0  ;;  %s645_s0 = inlined_call_operand.hbm [shape: f32[16,128], index: 0, kind: input, shape index: {}]   ;;  %s646_s1 = inlined_call_operand.hbm [shape: f32[16,128], index: 1, kind: output, shape index: {}]  }
   0x1   :  { %7 = vsyncpa [#allocation4], 0  ;;  %s12_s8 = sshll.u32 %s645_s0, 4  ;;  %s429_s9 = smov [#allocation2]   ;;  %s13_s8 = int_to_ptr.hbm [resolvable:$true] %s12_s8 }
   0x2   :  { %s14_s10 = sshll.u32 %s429_s9, 4  ;;  %s430_s11 = smov 128   ;;  %s15_s10 = int_to_ptr.vmem [resolvable:$true] %s14_s10 }
   0x3   :  { %s431_s12 = smov 8  }
   0x4   :  { %20 = dma.hbm_to_vmem [thread:$0]  %s13_s8, 256, %s15_s10, [#allocation3], %s430_s11, %s430_s11, %s431_s12  }
   0x5   :  { %425 = dma.done.wait [#allocation3], 256  }
   0x6   :  { %426 = vsyncadd [#allocation3], 4294967040  ;;  %v456_v0 = vld [vmem:[#allocation2] sm:$0xff]  ;;  %v458_v1 = vld [vmem:[#allocation2 + $0x8] sm:$0xff]  ;;  %v432_v23 = vmov 683565275  }
   0x7   :  { %v27_v2 = vand.u32 2147483647, %v456_v0  ;;  %v30_v3 = vand.u32 2139095040, %v456_v0  ;;  %v181_v4 = vand.u32 2147483647, %v458_v1  ;;  %v184_v5 = vand.u32 2139095040, %v458_v1 }
   0x8   :  { %v433_v25 = vmov 2475754826   ;;  %v434_v27 = vmov 2131351028   ;;  %v435_v29 = vmov 2102212464  }
   0x9   :  { %v31_v6 = vshrl.u32 %v30_v3, 23  ;;  %v34_v7 = vand.u32 8388607, %v27_v2  ;;  %v185_v8 = vshrl.u32 %v184_v5, 23  ;;  %v188_v12 = vand.u32 8388607, %v181_v4 }
   0xa   :  { %v436_v31 = vmov 920167782   ;;  %v437_v40 = vmov 1326507024   ;;  %s439_s0 = smov [#allocation5]   ;;  %s347_s16 = sshll.u32 %s646_s1, 4  ;;  %s348_s16 = int_to_ptr.hbm [resolvable:$true] %s347_s16 }
   0xb   :  { %v360_v9 = vadd.s32 4294967169, %v31_v6  ;;  %v35_v10 = vor.u32 8388608, %v34_v7  ;;  %v363_v11 = vadd.s32 4294967169, %v185_v8  ;;  %v189_v17 = vor.u32 8388608, %v188_v12  ;;  %s345_s13 = sshll.u32 %s439_s0, 4  ;;  %s346_s13 = int_to_ptr.vmem [resolvable:$true] %s345_s13 }
   0xd   :  { %v37_v13 = vadd.s32 1, %v360_v9  ;;  %v191_v14 = vadd.s32 1, %v363_v11  ;;  %v468_v16 = vshll.u32 %v35_v10, 8  ;;  %v478_v34 = vshll.u32 %v189_v17, 8 }
   0xf   :  { %vm38_vm0 = vcmp.gt.s32.totalorder %v37_v13, 0  ;;  %vm192_vm1 = vcmp.gt.s32.totalorder %v191_v14, 0  ;;  %v76_v33 = vand.u32 65535, %v468_v16  ;;  %v77_v38 = vshrl.u32 %v468_v16, 16 }
  0x10   :  { %v39_v15 = vsel %vm38_vm0, %v37_v13, 0  ;;  %v193_v19 = vsel %vm192_vm1, %v191_v14, 0 }
  0x11   :  { %v41_v18 = vand.u32 31, %v39_v15  ;;  %v470_v20 = vshrl.u32 %v39_v15, 5  ;;  %v472_v21 = vand.u32 31, %v193_v19  ;;  %v496_v51 = vshrl.u32 %v193_v19, 5 }
  0x13   :  { %v42_v22 = vsub.s32 32, %v41_v18  ;;  %v44_v24 = vshll.u32 %v432_v23, %v41_v18  ;;  %v47_v26 = vshll.u32 %v433_v25, %v41_v18  ;;  %v50_v28 = vshll.u32 %v434_v27, %v41_v18 }
  0x14   :  { %v53_v30 = vshll.u32 %v435_v29, %v41_v18  ;;  %v56_v32 = vshll.u32 %v436_v31, %v41_v18  ;;  %vm59_vm2 = vcmp.lt.s32.totalorder %v470_v20, 1  ;;  %vm62_vm3 = vcmp.lt.s32.totalorder %v470_v20, 4 }
  0x15   :  { %v45_v35 = vshrl.u32 %v433_v25, %v42_v22  ;;  %v48_v36 = vshrl.u32 %v434_v27, %v42_v22  ;;  %v51_v37 = vshrl.u32 %v435_v29, %v42_v22  ;;  %v54_v39 = vshrl.u32 %v436_v31, %v42_v22 }
  0x16   :  { %v57_v41 = vshrl.u32 %v437_v40, %v42_v22  ;;  %v487_v45 = vsub.s32 32, %v472_v21  ;;  %v43_v46 = vshrl.u32 %v432_v23, %v42_v22  ;;  %vm61_vm4 = vcmp.lt.s32.totalorder %v470_v20, 3 }
  0x17   :  { %v46_v42 = vor.u32 %v45_v35, %v44_v24  ;;  %v49_v43 = vor.u32 %v48_v36, %v47_v26  ;;  %v52_v44 = vor.u32 %v51_v37, %v50_v28  ;;  %v55_v47 = vor.u32 %v54_v39, %v53_v30 }
  0x18   :  { %v58_v48 = vor.u32 %v57_v41, %v56_v32  ;;  %vm60_vm5 = vcmp.lt.s32.totalorder %v470_v20, 2  ;;  %v198_v54 = vshll.u32 %v432_v23, %v472_v21  ;;  %v201_v55 = vshll.u32 %v433_v25, %v472_v21 }
  0x19   :  { %v67_v49 = vsel %vm59_vm2, %v46_v42, %v49_v43  ;;  %v71_v50 = vsel %vm59_vm2, %v49_v43, %v52_v44  ;;  %v68_v52 = vsel %vm62_vm3, %v55_v47, 920167782  ;;  %v64_v56 = vsel %vm62_vm3, %v52_v44, 2102212464 }
  0x1a   :  { %v72_v53 = vsel %vm62_vm3, %v58_v48, 1326507024  ;;  %v69_v57 = vsel %vm61_vm4, %v52_v44, %v68_v52  ;;  %v199_v59 = vshrl.u32 %v433_v25, %v487_v45  ;;  %v63_v60 = vsel %vm59_vm2, %v43_v46, %v46_v42 }
  0x1b   :  { %v73_v58 = vsel %vm61_vm4, %v55_v47, %v72_v53  ;;  %v70_v61 = vsel %vm60_vm5, %v67_v49, %v69_v57  ;;  %v202_v63 = vshrl.u32 %v434_v27, %v487_v45  ;;  %v65_v8 = vsel %vm61_vm4, %v49_v43, %v64_v56 }
  0x1c   :  { %v74_v62 = vsel %vm60_vm5, %v71_v50, %v73_v58  ;;  %v100_v6 = vand.u32 65535, %v70_v61  ;;  %v101_v7 = vshrl.u32 %v70_v61, 16  ;;  %v521_v9 = vor.u32 %v199_v59, %v198_v54 }
  0x1d   :  { %v78_v3 = vand.u32 65535, %v74_v62  ;;  %v79_v5 = vshrl.u32 %v74_v62, 16  ;;  %v523_v10 = vor.u32 %v202_v63, %v201_v55  ;;  %v204_v11 = vshll.u32 %v434_v27, %v472_v21 }
  0x1e   :  { %v205_v15 = vshrl.u32 %v435_v29, %v487_v45  ;;  %v102_v18 = vmul.u32 %v100_v6, %v76_v33  ;;  %v103_v19 = vmul.u32 %v101_v7, %v76_v33  ;;  %v104_v22 = vmul.u32 %v100_v6, %v77_v38 }
  0x1f   :  { %v80_v12 = vmul.u32 %v78_v3, %v76_v33  ;;  %v81_v13 = vmul.u32 %v79_v5, %v76_v33  ;;  %v82_v14 = vmul.u32 %v78_v3, %v77_v38  ;;  %v83_v17 = vmul.u32 %v79_v5, %v77_v38 }
  0x20   :  { %v105_v28 = vmul.u32 %v101_v7, %v77_v38  ;;  %v106_v32 = vshll.u32 %v103_v19, 16  ;;  %v107_v35 = vshrl.u32 %v103_v19, 16  ;;  %v108_v36 = vshll.u32 %v104_v22, 16 }
  0x21   :  { %v84_v24 = vshll.u32 %v81_v13, 16  ;;  %v85_v25 = vshrl.u32 %v81_v13, 16  ;;  %v86_v26 = vshll.u32 %v82_v14, 16  ;;  %v87_v30 = vshrl.u32 %v82_v14, 16 }
  0x22   :  { %v109_v37 = vshrl.u32 %v104_v22, 16  ;;  %v207_v39 = vshll.u32 %v435_v29, %v472_v21  ;;  %v438_v41 = vmov 0   ;;  %vm110_vm7 = vc.u32 %v102_v18, %v106_v32 }
  0x23   :  { %vm88_vm6 = vc.u32 %v80_v12, %v84_v24  ;;  %v90_v27 = vadd.s32 %v84_v24, %v80_v12  ;;  %v112_v33 = vadd.s32 %v106_v32, %v102_v18  ;;  %v208_v43 = vshrl.u32 %v436_v31, %v487_v45 }
  0x24   :  { %v89_v42 = vsel %vm88_vm6, 1, %v438_v41  ;;  %v111_v38 = vsel %vm110_vm7, 1, %v438_v41  ;;  %v210_v46 = vshll.u32 %v436_v31, %v472_v21  ;;  %v206_v29 = vor.u32 %v205_v15, %v204_v11 }
  0x25   :  { %v91_v44 = vadd.s32 %v89_v42, %v83_v17  ;;  %vm92_vm8 = vc.u32 %v90_v27, %v86_v26  ;;  %v113_v48 = vadd.s32 %v111_v38, %v105_v28  ;;  %vm114_vm9 = vc.u32 %v112_v33, %v108_v36 }
  0x26   :  { %v93_v47 = vsel %vm92_vm8, 1, %v438_v41  ;;  %v115_v50 = vsel %vm114_vm9, 1, %v438_v41  ;;  %v209_v52 = vor.u32 %v208_v43, %v207_v39  ;;  %v211_v53 = vshrl.u32 %v437_v40, %v487_v45 }
  0x27   :  { %v95_v49 = vadd.s32 %v93_v47, %v91_v44  ;;  %v540_v54 = vadd.s32 %v112_v33, %v108_v36  ;;  %v117_v55 = vadd.s32 %v115_v50, %v113_v48  ;;  %vm213_vm10 = vcmp.lt.s32.totalorder %v496_v51, 1 }
  0x28   :  { %vm215_vm11 = vcmp.lt.s32.totalorder %v496_v51, 3  ;;  %v212_v31 = vor.u32 %v211_v53, %v210_v46  ;;  %vm214_vm12 = vcmp.lt.s32.totalorder %v496_v51, 2  ;;  %vm216_vm13 = vcmp.lt.s32.totalorder %v496_v51, 4 }
  0x29   :  { %v96_v21 = vadd.s32 %v95_v49, %v85_v25  ;;  %v66_v56 = vsel %vm60_vm5, %v63_v60, %v65_v8  ;;  %v118_v57 = vadd.s32 %v117_v55, %v107_v35  ;;  %v221_v40 = vsel %vm213_vm10, %v521_v9, %v523_v10 }
  0x2a   :  { %v222_v58 = vsel %vm216_vm13, %v209_v52, 920167782  ;;  %v225_v62 = vsel %vm213_vm10, %v523_v10, %v206_v29  ;;  %v230_v20 = vand.u32 65535, %v478_v34  ;;  %v226_v3 = vsel %vm216_vm13, %v212_v31, 1326507024 }
  0x2b   :  { %v554_v59 = vadd.s32 %v96_v21, %v87_v30  ;;  %v223_v61 = vsel %vm215_vm11, %v206_v29, %v222_v58  ;;  %v119_v60 = vadd.s32 %v118_v57, %v109_v37  ;;  %v231_v5 = vshrl.u32 %v478_v34, 16 }
  0x2c   :  { %v224_v63 = vsel %vm214_vm12, %v221_v40, %v223_v61  ;;  %v120_v6 = vmul.u32 %v468_v16, %v66_v56  ;;  %v227_v7 = vsel %vm215_vm11, %v209_v52, %v226_v3  ;;  %v197_v18 = vshrl.u32 %v432_v23, %v487_v45 }
  0x2d   :  { %vm122_vm14 = vc.u32 %v554_v59, %v540_v54  ;;  %v254_v8 = vand.u32 65535, %v224_v63  ;;  %v123_v11 = vadd.s32 1, %v119_v60  ;;  %v228_v12 = vsel %vm214_vm12, %v225_v62, %v227_v7 }
  0x2e   :  { %v255_v13 = vshrl.u32 %v224_v63, 16  ;;  %v232_v14 = vand.u32 65535, %v228_v12  ;;  %v233_v15 = vshrl.u32 %v228_v12, 16  ;;  %v218_v35 = vsel %vm216_vm13, %v206_v29, 2102212464 }
  0x2f   :  { %v124_v17 = vsel %vm122_vm14, %v123_v11, %v119_v60  ;;  %v258_v16 = vmul.u32 %v254_v8, %v231_v5  ;;  %v256_v26 = vmul.u32 %v254_v8, %v230_v20  ;;  %v217_v37 = vsel %vm213_vm10, %v197_v18, %v521_v9 }
  0x30   :  { %v257_v19 = vmul.u32 %v255_v13, %v230_v20  ;;  %v125_v22 = vadd.s32 %v124_v17, %v120_v6  ;;  %v234_v24 = vmul.u32 %v232_v14, %v230_v20  ;;  %v235_v25 = vmul.u32 %v233_v15, %v230_v20 }
  0x31   :  { %v236_v28 = vmul.u32 %v232_v14, %v231_v5  ;;  %v237_v36 = vmul.u32 %v233_v15, %v231_v5  ;;  %v259_v23 = vmul.u32 %v255_v13, %v231_v5  ;;  %v262_v45 = vshll.u32 %v258_v16, 16 }
  0x32   :  { %v260_v30 = vshll.u32 %v257_v19, 16  ;;  %v126_v32 = vadd.s32 536870912, %v125_v22  ;;  %v238_v27 = vshll.u32 %v235_v25, 16  ;;  %v219_v43 = vsel %vm215_vm11, %v523_v10, %v218_v35 }
  0x33   :  { %v240_v39 = vshll.u32 %v236_v28, 16  ;;  %v239_v9 = vshrl.u32 %v235_v25, 16  ;;  %v261_v49 = vshrl.u32 %v257_v19, 16  ;;  %v241_v53 = vshrl.u32 %v236_v28, 16 }
  0x34   :  { %v581_v42 = vshrl.u32 %v126_v32, 30  ;;  %vm242_vm15 = vc.u32 %v234_v24, %v238_v27  ;;  %v244_v33 = vadd.s32 %v238_v27, %v234_v24  ;;  %vm264_vm0 = vc.u32 %v256_v26, %v260_v30 }
  0x35   :  { %v243_v44 = vsel %vm242_vm15, 1, %v438_v41  ;;  %v265_v38 = vsel %vm264_vm0, 1, %v438_v41  ;;  %v266_v46 = vadd.s32 %v260_v30, %v256_v26  ;;  %v263_v21 = vshrl.u32 %v258_v16, 16 }
  0x36   :  { %v128_v47 = vshll.u32 %v581_v42, 30  ;;  %v245_v48 = vadd.s32 %v243_v44, %v237_v36  ;;  %vm246_vm1 = vc.u32 %v244_v33, %v240_v39  ;;  %v267_v50 = vadd.s32 %v265_v38, %v259_v23 }
  0x37   :  { %v247_v29 = vsel %vm246_vm1, 1, %v438_v41  ;;  %vm268_vm2 = vc.u32 %v266_v46, %v262_v45  ;;  %v270_v40 = vadd.s32 %v266_v46, %v262_v45  ;;  %v220_v58 = vsel %vm214_vm12, %v217_v37, %v219_v43 }
  0x38   :  { %v129_v52 = vsub.s32 %v125_v22, %v128_v47  ;;  %v249_v55 = vadd.s32 %v247_v29, %v245_v48  ;;  %v269_v10 = vsel %vm268_vm2, 1, %v438_v41  ;;  %v274_v3 = vmul.u32 %v478_v34, %v220_v58 }
  0x39   :  { %v271_v31 = vadd.s32 %v269_v10, %v267_v50  ;;  %v121_v41 = vadd.s32 %v540_v54, %v554_v59  ;;  %vm29_vm7 = vcmp.lt.s32.totalorder %v456_v0, 0  ;;  %vm602_vm8 = vcmp.le.f32.partialorder %v27_v2, 0.7853982 }
  0x3a   :  { %vm130_vm3 = vcmp.lt.s32.totalorder %v129_v52, 0  ;;  %v131_v56 = vsub.s32 0, %v129_v52  ;;  %v250_v57 = vadd.s32 %v249_v55, %v239_v9  ;;  %v151_v37 = vsub.s32 4, %v581_v42 }
  0x3b   :  { %v272_v61 = vadd.s32 %v271_v31, %v261_v49  ;;  %vm183_vm11 = vcmp.lt.s32.totalorder %v458_v1, 0  ;;  %vm620_vm13 = vcmp.le.f32.partialorder %v181_v4, 0.7853982  ;;  %vm170_vm15 = vweird.f32 %v456_v0 }
  0x3c   :  { %v132_v62 = vsel %vm130_vm3, %v131_v56, %v129_v52  ;;  %v251_v20 = vadd.s32 %v250_v57, %v241_v53  ;;  %v152_v46 = vsel %vm29_vm7, %v151_v37, %v581_v42  ;;  %vm324_vm3 = vweird.f32 %v458_v1 }
  0x3d   :  { %v133_v60 = vclz %v132_v62  ;;  %v273_v63 = vadd.s32 %v272_v61, %v263_v21  ;;  %v154_v50 = vsel %vm602_vm8, 0, %v152_v46 }
  0x3e   :  { %vm276_vm4 = vc.u32 %v251_v20, %v270_v40  ;;  %v275_v45 = vadd.s32 %v270_v40, %v251_v20  ;;  %v171_v56 = vand.u32 3, %v154_v50 }
  0x3f   :  { %v361_v5 = vadd.s32 4294967294, %v133_v60  ;;  %v277_v6 = vadd.s32 1, %v273_v63 }
  0x40   :  { %vm176_vm10 = vcmp.eq.s32.totalorder %v171_v56, 2  ;;  %vm173_vm12 = vcmp.eq.s32.totalorder %v171_v56, 0  ;;  %vm172_vm14 = vcmp.lt.s32.totalorder %v171_v56, 2 }
  0x41   :  { %vm362_vm5 = vcmp.lt.s32.totalorder %v361_v5, 0  ;;  %v278_v7 = vsel %vm276_vm4, %v277_v6, %v273_v63 }
  0x42   :  { %v136_v8 = vsel %vm362_vm5, 0, %v361_v5  ;;  %v279_v11 = vadd.s32 %v278_v7, %v274_v3 }
  0x43   :  { %v137_v12 = vsub.s32 32, %v136_v8  ;;  %v138_v51 = vshll.u32 %v129_v52, %v136_v8  ;;  %v141_v13 = vsub.s32 4294967266, %v136_v8 }
  0x44   :  { %v280_v14 = vadd.s32 536870912, %v279_v11 }
  0x45   :  { %v139_v15 = vshrl.u32 %v121_v41, %v137_v12  ;;  %v142_v17 = vadd.s32 127, %v141_v13 }
  0x46   :  { %v596_v18 = vshrl.u32 %v280_v14, 30 }
  0x47   :  { %v140_v19 = vor.u32 %v139_v15, %v138_v51  ;;  %v143_v34 = vshll.u32 %v142_v17, 23 }
  0x48   :  { %v282_v16 = vshll.u32 %v596_v18, 30  ;;  %v305_v12 = vsub.s32 4, %v596_v18 }
  0x49   :  { %v144_v22 = vor.u32 4788187, %v143_v34  ;;  %v147_v24 = vcvt.s32.f32 %v140_v19 }
  0x4a   :  { %v283_v25 = vsub.s32 %v279_v11, %v282_v16  ;;  %v306_v34 = vsel %vm183_vm11, %v305_v12, %v596_v18 }
  0x4b   :  { %v145_v54 = vand.u32 2147483647, %v144_v22 }
  0x4c   :  { %vm284_vm6 = vcmp.lt.s32.totalorder %v283_v25, 0  ;;  %v285_v59 = vsub.s32 0, %v283_v25 }
  0x4d   :  { %v148_v26 = vmul.f32 %v147_v24, %v145_v54 }
  0x4e   :  { %v286_v28 = vsel %vm284_vm6, %v285_v59, %v283_v25 }
  0x4f   :  { %v149_v32 = vxor.u32 2147483648, %v148_v26  ;;  %v287_v35 = vclz %v286_v28 }
  0x51   :  { %v150_v36 = vsel %vm29_vm7, %v149_v32, %v148_v26  ;;  %v364_v27 = vadd.s32 4294967294, %v287_v35 }
  0x52   :  { %v153_v39 = vsel %vm602_vm8, %v456_v0, %v150_v36 }
  0x53   :  { %v155_v23 = vmul.f32 %v153_v39, %v153_v39  ;;  %vm365_vm9 = vcmp.lt.s32.totalorder %v364_v27, 0 }
  0x54   :  { %v290_v33 = vsel %vm365_vm9, 0, %v364_v27 }
  0x55   :  { %v156_v2 = vmul.f32 -0.001358992, %v155_v23  ;;  %v163_v43 = vmul.f32 -0.00019511016, %v155_v23  ;;  %v291_v44 = vsub.s32 32, %v290_v33  ;;  %v292_v38 = vshll.u32 %v283_v25, %v290_v33 }
  0x56   :  { %v295_v47 = vsub.s32 4294967266, %v290_v33  ;;  %v308_v25 = vsel %vm620_vm13, 0, %v306_v34 }
  0x57   :  { %v157_v9 = vadd.f32 0.041655596, %v156_v2  ;;  %v164_v48 = vadd.f32 0.008332121, %v163_v43  ;;  %v293_v29 = vshrl.u32 %v275_v45, %v291_v44  ;;  %v325_v30 = vand.u32 3, %v308_v25 }
  0x58   :  { %v296_v49 = vadd.s32 127, %v295_v47 }
  0x59   :  { %v158_v52 = vmul.f32 %v157_v9, %v155_v23  ;;  %v165_v53 = vmul.f32 %v164_v48, %v155_v23  ;;  %v294_v55 = vor.u32 %v293_v29, %v292_v38  ;;  %vm330_vm0 = vcmp.eq.s32.totalorder %v325_v30, 2 }
  0x5a   :  { %v297_v10 = vshll.u32 %v296_v49, 23  ;;  %vm327_vm1 = vcmp.eq.s32.totalorder %v325_v30, 0  ;;  %vm326_vm2 = vcmp.lt.s32.totalorder %v325_v30, 2 }
  0x5b   :  { %v159_v21 = vadd.f32 -0.4999988, %v158_v52  ;;  %v166_v31 = vadd.f32 -0.16666654, %v165_v53  ;;  %v301_v40 = vcvt.s32.f32 %v294_v55 }
  0x5c   :  { %v298_v57 = vor.u32 4788187, %v297_v10 }
  0x5d   :  { %v160_v58 = vmul.f32 %v159_v21, %v155_v23  ;;  %v167_v61 = vmul.f32 %v166_v31, %v155_v23 }
  0x5e   :  { %v299_v42 = vand.u32 2147483647, %v298_v57 }
  0x5f   :  { %v161_v62 = vadd.f32 1.0, %v160_v58  ;;  %v168_v20 = vadd.f32 1.0, %v167_v61 }
  0x60   :  { %v302_v60 = vmul.f32 %v301_v40, %v299_v42 }
  0x61   :  { %v169_v63 = vmul.f32 %v168_v20, %v153_v39  ;;  %v177_v3 = vxor.u32 2147483648, %v161_v62 }
  0x62   :  { %v303_v6 = vxor.u32 2147483648, %v302_v60 }
  0x63   :  { %v174_v41 = vxor.u32 2147483648, %v169_v63  ;;  %v178_v7 = vsel %vm176_vm10, %v177_v3, %v169_v63 }
  0x64   :  { %v304_v8 = vsel %vm183_vm11, %v303_v6, %v302_v60 }
  0x65   :  { %v175_v11 = vsel %vm173_vm12, %v161_v62, %v174_v41  ;;  %v307_v51 = vsel %vm620_vm13, %v458_v1, %v304_v8 }
  0x66   :  { %v179_v4 = vsel %vm172_vm14, %v175_v11, %v178_v7  ;;  %v309_v13 = vmul.f32 %v307_v51, %v307_v51 }
  0x67   :  { %v180_v14 = vsel %vm170_vm15, nan, %v179_v4 }
  0x68   :  { %v310_v15 = vmul.f32 -0.001358992, %v309_v13  ;;  %v317_v17 = vmul.f32 -0.00019511016, %v309_v13  ;;  %v335_v19 = vsub.f32 1.0, %v180_v14 }
  0x6a   :  { %v311_v16 = vadd.f32 0.041655596, %v310_v15  ;;  %v318_v22 = vadd.f32 0.008332121, %v317_v17  ;;  %v337_v24 = vadd.f32 %v335_v19, %v456_v0 }
  0x6c   :  { %v312_v54 = vmul.f32 %v311_v16, %v309_v13  ;;  %v319_v59 = vmul.f32 %v318_v22, %v309_v13  ;;  %339 = vst [vmem:[#allocation5] sm:$0xff] %v337_v24 }
  0x6e   :  { %v313_v26 = vadd.f32 -0.4999988, %v312_v54  ;;  %v320_v28 = vadd.f32 -0.16666654, %v319_v59 }
  0x70   :  { %v314_v32 = vmul.f32 %v313_v26, %v309_v13  ;;  %v321_v35 = vmul.f32 %v320_v28, %v309_v13 }
  0x72   :  { %v315_v36 = vadd.f32 1.0, %v314_v32  ;;  %v322_v27 = vadd.f32 1.0, %v321_v35 }
  0x74   :  { %v323_v37 = vmul.f32 %v322_v27, %v307_v51  ;;  %v331_v18 = vxor.u32 2147483648, %v315_v36 }
  0x76   :  { %v328_v39 = vxor.u32 2147483648, %v323_v37  ;;  %v332_v0 = vsel %vm330_vm0, %v331_v18, %v323_v37 }
  0x78   :  { %v329_v23 = vsel %vm327_vm1, %v315_v36, %v328_v39 }
  0x79   :  { %v333_v45 = vsel %vm326_vm2, %v329_v23, %v332_v0 }
  0x7a   :  { %v334_v33 = vsel %vm324_vm3, nan, %v333_v45 }
  0x7b   :  { %v336_v2 = vsub.f32 1.0, %v334_v33 }
  0x7d   :  { %v338_v43 = vadd.f32 %v336_v2, %v458_v1 }
  0x7f   :  { %340 = vst [vmem:[#allocation5 + $0x8] sm:$0xff] %v338_v43 }
  0x80   :  { %353 = dma.vmem_to_hbm [thread:$0]  %s346_s13, 256, %s348_s16, [#allocation4], %s430_s11, %s430_s11, %s431_s12  }
  0x81   :  { %427 = dma.done.wait [#allocation4], 256  }
  0x82   :  { %428 = vsyncadd [#allocation4], 4294967040 }
  0x83   :  { %358 = vsyncpa [#allocation3], 1 }
  0x84   :  { %359 = vsyncpa [#allocation4], 1 }

</bundles_post_ra>
